<compile_context>
chip_gen: v7x
topology: tpu7x:2x2x1
jax: 0.10.0
libtpu: 0.0.40
codegen_flags: <defaults>
</compile_context>

<pallas_src>
import functools

import jax
import jax.numpy as jnp
import numpy as np
from jax.experimental import pallas as pl
from jax.experimental.pallas import tpu as pltpu


def _round_up(x, m):
    return ((x + m - 1) // m) * m


# ----------------------------------------------------------------------------
# Fused Pallas kernel: embedding lookup + linear1(+ReLU) + linear2 + log_softmax
# ----------------------------------------------------------------------------
def _ngram_kernel(idx_ref, emb_ref, w1_ref, b1_ref, w2_ref, b2_ref, o_ref, *,
                  context_size, embedding_dim, vocab_size):
    D = embedding_dim
    V_tab = emb_ref.shape[0]                     # real vocab rows in the table

    emb = emb_ref[...]                           # (V, D), tiny -> lives in vregs
    vocab_iota = jax.lax.broadcasted_iota(jnp.int32, (1, V_tab), 1)

    # hidden = concat_c(emb[idx[c]]) @ W1 + b1, accumulated chunk-by-chunk so the
    # concatenated embedding row is never materialized / reshaped.
    h = b1_ref[...].astype(jnp.float32)          # (1, 128)
    for c in range(context_size):                # static unroll (context_size is tiny)
        idx = idx_ref[c]                         # scalar index from SMEM
        onehot = (vocab_iota == idx).astype(jnp.float32)          # (1, V) gather-as-matmul
        e = jnp.dot(onehot, emb, preferred_element_type=jnp.float32)   # (1, D)
        w1c = w1_ref[pl.ds(c * D, D), :]                          # (D, 128) static chunk
        h = h + jnp.dot(e, w1c, preferred_element_type=jnp.float32)
    h = jnp.maximum(h, 0.0)                      # ReLU

    # linear2 -> padded (lane-dense) logits
    logits = jnp.dot(h, w2_ref[...], preferred_element_type=jnp.float32) + b2_ref[...]

    # Mask padded vocab columns so they do not contribute to the softmax sum.
    col = jax.lax.broadcasted_iota(jnp.int32, logits.shape, 1)
    logits = jnp.where(col < vocab_size, logits, -jnp.inf)

    # log_softmax over the vocab dimension.
    m = jnp.max(logits, axis=-1, keepdims=True)
    shifted = logits - m
    lse = jnp.log(jnp.sum(jnp.exp(shifted), axis=-1, keepdims=True))
    o_ref[...] = (shifted - lse).astype(o_ref.dtype)


# ----------------------------------------------------------------------------
# Wrapper
# ----------------------------------------------------------------------------
def ngram_forward(inputs, params, *, vocab_size, embedding_dim, context_size):
    """inputs: (context_size,) int32 token ids -> (1, vocab_size) log-probs."""
    vp = params["w2"].shape[1]                   # vocab padded to a multiple of 128
    kernel = functools.partial(
        _ngram_kernel,
        context_size=context_size,
        embedding_dim=embedding_dim,
        vocab_size=vocab_size,
    )
    out = pl.pallas_call(
        kernel,
        out_shape=jax.ShapeDtypeStruct((1, vp), jnp.float32),
        in_specs=[
            pl.BlockSpec(memory_space=pltpu.MemorySpace.SMEM),   # token indices
            pl.BlockSpec(memory_space=pltpu.MemorySpace.VMEM),   # embedding table (V, D)
            pl.BlockSpec(memory_space=pltpu.MemorySpace.VMEM),   # W1 (ctx*D, 128)
            pl.BlockSpec(memory_space=pltpu.MemorySpace.VMEM),   # b1 (1, 128)
            pl.BlockSpec(memory_space=pltpu.MemorySpace.VMEM),   # W2 (128, Vp)
            pl.BlockSpec(memory_space=pltpu.MemorySpace.VMEM),   # b2 (1, Vp)
        ],
        out_specs=pl.BlockSpec(memory_space=pltpu.MemorySpace.VMEM),
    )(inputs, params["emb"], params["w1"], params["b1"], params["w2"], params["b2"])
    return out[:, :vocab_size]


# ----------------------------------------------------------------------------
# Parameter init (PyTorch-style), pre-transposed / pre-padded ONCE at init time
# ----------------------------------------------------------------------------
def init_params(key, vocab_size, embedding_dim, context_size, hidden=128):
    ks = jax.random.split(key, 5)
    vp = _round_up(vocab_size, 128)              # lane-dense vocab padding
    fan1 = context_size * embedding_dim

    def u(k, shape, fan_in):
        bound = 1.0 / np.sqrt(fan_in)
        return jax.random.uniform(k, shape, jnp.float32, -bound, bound)

    emb = jax.random.normal(ks[0], (vocab_size, embedding_dim), jnp.float32)  # nn.Embedding ~ N(0,1)
    # Linear weights stored as (in, out); W2/b2 zero-padded on the vocab axis.
    w1 = u(ks[1], (fan1, hidden), fan1)
    b1 = u(ks[2], (1, hidden), fan1)
    w2 = jnp.zeros((hidden, vp), jnp.float32).at[:, :vocab_size].set(
        u(ks[3], (hidden, vocab_size), hidden))
    b2 = jnp.zeros((1, vp), jnp.float32).at[:, :vocab_size].set(
        u(ks[4], (1, vocab_size), hidden))
    return {"emb": emb, "w1": w1, "b1": b1, "w2": w2, "b2": b2}


# Pure-JAX reference for correctness checking.
def ref_forward(inputs, params, vocab_size):
    embeds = params["emb"][inputs].reshape(1, -1)
    h = jnp.maximum(embeds @ params["w1"] + params["b1"], 0.0)
    logits = h @ params["w2"][:, :vocab_size] + params["b2"][:, :vocab_size]
    return jax.nn.log_softmax(logits, axis=-1)


if __name__ == "__main__":
    VOCAB, EMB_DIM, CTX = 32, 16, 2              # small shapes consistent with the module
    key = jax.random.PRNGKey(0)
    k_idx, k_par = jax.random.split(key)
    inputs = jax.random.randint(k_idx, (CTX,), 0, VOCAB, dtype=jnp.int32)
    params = init_params(k_par, VOCAB, EMB_DIM, CTX)

    fwd = jax.jit(functools.partial(
        ngram_forward, vocab_size=VOCAB, embedding_dim=EMB_DIM, context_size=CTX))
    log_probs = jax.block_until_ready(fwd(inputs, params))

    assert log_probs.shape == (1, VOCAB), log_probs.shape
    assert bool(jnp.all(jnp.isfinite(log_probs)))
    ref = ref_forward(inputs, params, VOCAB)
    np.testing.assert_allclose(np.asarray(log_probs), np.asarray(ref), atol=1e-5, rtol=1e-5)
    assert abs(float(jnp.sum(jnp.exp(log_probs))) - 1.0) < 1e-3   # valid log-distribution
    print("KERNEL_OK")
</pallas_src>

<mosaic_0001>
module attributes {stable_mosaic.version = 11 : i64} {
  func.func @_ngram_kernel(%arg0: memref<2xi32, #tpu.memory_space<smem>>, %arg1: memref<32x16xf32, #tpu.memory_space<vmem>>, %arg2: memref<32x128xf32, #tpu.memory_space<vmem>>, %arg3: memref<1x128xf32, #tpu.memory_space<vmem>>, %arg4: memref<128x128xf32, #tpu.memory_space<vmem>>, %arg5: memref<1x128xf32, #tpu.memory_space<vmem>>, %arg6: memref<1x128xf32, #tpu.memory_space<vmem>>) attributes {dimension_semantics = [], scalar_prefetch = 0 : i64, scratch_operands = 0 : i64, tpu.core_type = #tpu.core_type<tc>} {
    %c0 = arith.constant 0 : index
    %c0_0 = arith.constant 0 : index
    %0 = vector.load %arg1[%c0, %c0_0] : memref<32x16xf32, #tpu.memory_space<vmem>>, vector<32x16xf32>
    %1 = tpu.iota {dimensions = array<i32: 1>} : vector<1x32xi32>
    %c0_1 = arith.constant 0 : index
    %c0_2 = arith.constant 0 : index
    %2 = vector.load %arg3[%c0_1, %c0_2] : memref<1x128xf32, #tpu.memory_space<vmem>>, vector<1x128xf32>
    %c0_3 = arith.constant 0 : index
    %3 = memref.load %arg0[%c0_3] : memref<2xi32, #tpu.memory_space<smem>>
    %4 = vector.broadcast %3 : i32 to vector<1x32xi32>
    %5 = arith.cmpi eq, %1, %4 : vector<1x32xi32>
    %6 = arith.extui %5 : vector<1x32xi1> to vector<1x32xi32>
    %7 = arith.sitofp %6 : vector<1x32xi32> to vector<1x32xf32>
    %cst = arith.constant dense<0.000000e+00> : vector<1x16xf32>
    %8 = tpu.matmul %7, %0, %cst {dimension_numbers = #tpu.dot_dimension_numbers<[1], [0], [0], [1], [0, 0, 1, 1], [], []>} : vector<1x32xf32>, vector<32x16xf32>, vector<1x16xf32> -> vector<1x16xf32>
    %c0_4 = arith.constant 0 : index
    %c0_5 = arith.constant 0 : index
    %9 = vector.load %arg2[%c0_4, %c0_5] : memref<32x128xf32, #tpu.memory_space<vmem>>, vector<16x128xf32>
    %cst_6 = arith.constant dense<0.000000e+00> : vector<1x128xf32>
    %10 = tpu.matmul %8, %9, %cst_6 {dimension_numbers = #tpu.dot_dimension_numbers<[1], [0], [0], [1], [0, 0, 1, 1], [], []>} : vector<1x16xf32>, vector<16x128xf32>, vector<1x128xf32> -> vector<1x128xf32>
    %11 = arith.addf %2, %10 : vector<1x128xf32>
    %c1 = arith.constant 1 : index
    %12 = memref.load %arg0[%c1] : memref<2xi32, #tpu.memory_space<smem>>
    %13 = vector.broadcast %12 : i32 to vector<1x32xi32>
    %14 = arith.cmpi eq, %1, %13 : vector<1x32xi32>
    %15 = arith.extui %14 : vector<1x32xi1> to vector<1x32xi32>
    %16 = arith.sitofp %15 : vector<1x32xi32> to vector<1x32xf32>
    %cst_7 = arith.constant dense<0.000000e+00> : vector<1x16xf32>
    %17 = tpu.matmul %16, %0, %cst_7 {dimension_numbers = #tpu.dot_dimension_numbers<[1], [0], [0], [1], [0, 0, 1, 1], [], []>} : vector<1x32xf32>, vector<32x16xf32>, vector<1x16xf32> -> vector<1x16xf32>
    %c16 = arith.constant 16 : index
    %c0_8 = arith.constant 0 : index
    %18 = vector.load %arg2[%c16, %c0_8] : memref<32x128xf32, #tpu.memory_space<vmem>>, vector<16x128xf32>
    %cst_9 = arith.constant dense<0.000000e+00> : vector<1x128xf32>
    %19 = tpu.matmul %17, %18, %cst_9 {dimension_numbers = #tpu.dot_dimension_numbers<[1], [0], [0], [1], [0, 0, 1, 1], [], []>} : vector<1x16xf32>, vector<16x128xf32>, vector<1x128xf32> -> vector<1x128xf32>
    %20 = arith.addf %11, %19 : vector<1x128xf32>
    %cst_10 = arith.constant 0.000000e+00 : f32
    %21 = vector.broadcast %cst_10 : f32 to vector<1x128xf32>
    %22 = arith.maximumf %20, %21 : vector<1x128xf32>
    %c0_11 = arith.constant 0 : index
    %c0_12 = arith.constant 0 : index
    %23 = vector.load %arg4[%c0_11, %c0_12] : memref<128x128xf32, #tpu.memory_space<vmem>>, vector<128x128xf32>
    %cst_13 = arith.constant dense<0.000000e+00> : vector<1x128xf32>
    %24 = tpu.matmul %22, %23, %cst_13 {dimension_numbers = #tpu.dot_dimension_numbers<[1], [0], [0], [1], [0, 0, 1, 1], [], []>} : vector<1x128xf32>, vector<128x128xf32>, vector<1x128xf32> -> vector<1x128xf32>
    %c0_14 = arith.constant 0 : index
    %c0_15 = arith.constant 0 : index
    %25 = vector.load %arg5[%c0_14, %c0_15] : memref<1x128xf32, #tpu.memory_space<vmem>>, vector<1x128xf32>
    %26 = arith.addf %24, %25 : vector<1x128xf32>
    %27 = tpu.iota {dimensions = array<i32: 1>} : vector<1x128xi32>
    %c32_i32 = arith.constant 32 : i32
    %28 = vector.broadcast %c32_i32 : i32 to vector<1x128xi32>
    %29 = arith.cmpi slt, %27, %28 : vector<1x128xi32>
    %cst_16 = arith.constant 0xFF800000 : f32
    %30 = vector.broadcast %cst_16 : f32 to vector<1x128xf32>
    %31 = arith.select %29, %26, %30 : vector<1x128xi1>, vector<1x128xf32>
    %cst_17 = arith.constant dense<0xFF800000> : vector<1xf32>
    %32 = vector.multi_reduction <maximumf>, %31, %cst_17 [1] : vector<1x128xf32> to vector<1xf32>
    %33 = vector.shape_cast %32 : vector<1xf32> to vector<1x1xf32>
    %34 = vector.broadcast %33 : vector<1x1xf32> to vector<1x128xf32>
    %35 = arith.subf %31, %34 : vector<1x128xf32>
    %36 = math.exp %35 : vector<1x128xf32>
    %cst_18 = arith.constant dense<0.000000e+00> : vector<1xf32>
    %37 = vector.multi_reduction <add>, %36, %cst_18 [1] : vector<1x128xf32> to vector<1xf32>
    %38 = vector.shape_cast %37 : vector<1xf32> to vector<1x1xf32>
    %39 = math.log %38 : vector<1x1xf32>
    %40 = vector.broadcast %39 : vector<1x1xf32> to vector<1x128xf32>
    %41 = arith.subf %35, %40 : vector<1x128xf32>
    %c0_19 = arith.constant 0 : index
    %c0_20 = arith.constant 0 : index
    %42 = vector.load %arg6[%c0_19, %c0_20] : memref<1x128xf32, #tpu.memory_space<vmem>>, vector<1x128xf32>
    tpu.vector_store %arg6[%c0_19, %c0_20], %41 {strides = array<i32>} : memref<1x128xf32, #tpu.memory_space<vmem>>, vector<1x128xf32>,
    return
  }
}

</mosaic_0001>

<bundles_post_ra>
// kernel: ngram_forward.1
= control target key start
LH: loop header
LB: loop body
LE: loop exit
PB: predicated region body
PF: predicated region fallthrough
CT: control target
= control target key end

     0   :  { %11 = vsyncpa [#allocation5], 0  ;;  %s846_s0 = inlined_call_operand.vmem [shape: s32[2], index: 0, kind: input, shape index: {}]   ;;  %s847_s1 = inlined_call_operand.vmem [shape: f32[32,16], index: 1, kind: input, shape index: {}]   ;;  %s848_s2 = inlined_call_operand.vmem [shape: f32[32,128], index: 2, kind: input, shape index: {}]   ;;  %s849_s3 = inlined_call_operand.vmem [shape: f32[1,128], index: 3, kind: input, shape index: {}]   ;;  %s850_s4 = inlined_call_operand.hbm [shape: f32[128,128], index: 4, kind: input, shape index: {}]   ;;  %s851_s5 = inlined_call_operand.vmem [shape: f32[1,128], index: 5, kind: input, shape index: {}]   ;;  %s852_s6 = inlined_call_operand.hbm [shape: f32[1,128], index: 6, kind: output, shape index: {}]  }
   0x1   :  { %12 = vsyncpa [#allocation3], 0 }
   0x2   :  { %13 = vsyncpa [#allocation4], 0  ;;  %s20_s23 = sshll.u32 %s846_s0, 4  ;;  %s21_s23 = int_to_ptr.vmem [resolvable:$true] %s20_s23 }
   0x3   :  { %s656_s24 = scalar_lea.vmem %s21_s23, 16  ;;  %p661_p1 = scmp.lt.s32.totalorder %s21_s23, %s21_s23 }
   0x4   :  { %p657_p0 = scmp.ne.s32.totalorder %s21_s23, %s656_s24  ;;  %p662_p2 = scmp.lt.s32.totalorder %s656_s24, %s656_s24 }
   0x6   :  { %p663_p3 = por %p662_p2, %p661_p1 }
   0x8   :  { %p664_p4 = pnand %p663_p3, %p657_p0 }
   0xa   :  { %667 = shalt.err (!%p664_p4)
}
   0xb   :  { %s718_s25 = smov [#allocation2]   ;;  %s719_s26 = smov [#allocation6]  }
   0xc   :  { %23 = dma.vmem_to_smem %s21_s23, 16, %s718_s25, [#allocation5]  }
   0xd   :  { %s35_s27 = sshll.u32 %s719_s26, 4  ;;  %s668_s30 = scalar_lea.hbm %s850_s4, 2048  ;;  %s36_s27 = int_to_ptr.vmem [resolvable:$true] %s35_s27 }
   0xe   :  { %p669_p5 = scmp.ne.s32.totalorder %s850_s4, %s668_s30  ;;  %p672_p6 = scmp.lt.u32.totalorder %s668_s30, %s850_s4 }
  0x10   :  { %p674_p7 = pnand %p672_p6, %p669_p5 }
  0x12   :  { %677 = shalt.err (!%p674_p7)
}
  0x13   :  { %s678_s10 = scalar_lea.vmem %s36_s27, 2048  ;;  %p683_p9 = scmp.lt.s32.totalorder %s36_s27, %s36_s27 }
  0x14   :  { %p679_p8 = scmp.ne.s32.totalorder %s36_s27, %s678_s10  ;;  %p684_p10 = scmp.lt.s32.totalorder %s678_s10, %s678_s10 }
  0x16   :  { %p685_p11 = por %p684_p10, %p683_p9 }
  0x18   :  { %p686_p12 = pnand %p685_p11, %p679_p8 }
  0x1a   :  { %689 = shalt.err (!%p686_p12)
}
  0x1b   :  { %s720_s11 = smov 128   ;;  %s721_s12 = smov 8  }
  0x1c   :  { %41 = dma.hbm_to_vmem [thread:$0]  %s850_s4, 2048, %s36_s27, [#allocation3], %s720_s11, %s720_s11, %s721_s12  }
  0x1d   :  { %712 = dma.done.wait [#allocation5], 16  }
  0x1e   :  { %713 = vsyncadd [#allocation5], 4294967280 }
  0x1f   :  { %714 = dma.done.wait [#allocation3], 2048  }
  0x20   :  { %715 = vsyncadd [#allocation3], 4294965248 }
  0x21   :  { %50 = sfence }
  0x22   :  { %v51_v0 = vld [vmem:[%s847_s1] sm:$0xff]  ;;  %v52_v1 = vld [vmem:[%s847_s1 + $0x8] sm:$0xff]  ;;  %v53_v2 = vld [vmem:[%s847_s1 + $0x10] sm:$0xff]  ;;  %v55_v3 = vlaneseq  ;;  %v722_v4 = vmov 0.0|0.0   ;;  %vm723_vm0 = vmmov 0   ;;  %v724_v7 = vmov 0.0  }
  0x23   :  { %599 = vmatprep.subr.bf16.mxu1 %v722_v4  ;;  %v600_v5 = vpack.c.bf16 %v52_v1, %v51_v0  ;;  %v54_v6 = vld [vmem:[%s847_s1 + $0x18] sm:$0xff]  ;;  %536 = vmatprep.mubr.msk.f32.mxu1 %vm723_vm0, %v724_v7  ;;  %s58_s22 = sld [smem:[#allocation2]]  ;;  %v137_v10 = vld [vmem:[%s848_s2] sm:$0xff]  ;;  %v138_v11 = vld [vmem:[%s848_s2 + $0x8] sm:$0xff]  ;;  %vm63_vm1 = vcmask 261120   ;;  %s491_s26 = sld [smem:[#allocation2 + $0x1]] }
  0x24   :  { %617 = vmatprep.subr.bf16.mxu0 %v722_v4  ;;  %596 = vmatprep.mubr.msk.f32.mxu0 %vm723_vm0, %v724_v7  ;;  %v603_v8 = vpack.c.bf16 %v54_v6, %v53_v2  ;;  %v793_v9 = vand.u32 127, %v55_v3  ;;  %v606_v13 = vpack.c.bf16 %v138_v11, %v137_v10  ;;  %vm139_vm3 = vcmask 130048   ;;  %v292_v18 = vld [vmem:[%s848_s2 + $0x10] sm:$0xff]  ;;  %v293_v19 = vld [vmem:[%s848_s2 + $0x18] sm:$0xff]  ;;  %v369_v22 = vld [vmem:[#allocation6] sm:$0xff] }
  0x25   :  { %601 = vmatpush3.bf16.msra.mxu1 %v600_v5  ;;  %v615_v21 = vpack.c.bf16 %v293_v19, %v292_v18  ;;  %v370_v23 = vld [vmem:[#allocation6 + $0x8] sm:$0xff]  ;;  %v371_v24 = vld [vmem:[#allocation6 + $0x10] sm:$0xff]  ;;  %v372_v26 = vld [vmem:[#allocation6 + $0x18] sm:$0xff]  ;;  %vm458_vm6 = vcmask 1040384  }
  0x26   :  { %602 = vmatprep.subr.bf16.mxu1 %v722_v4  ;;  %v618_v25 = vpack.c.bf16 %v370_v23, %v369_v22  ;;  %v621_v27 = vpack.c.bf16 %v372_v26, %v371_v24  ;;  %v373_v28 = vld [vmem:[#allocation6 + $0x20] sm:$0xff]  ;;  %v374_v29 = vld [vmem:[#allocation6 + $0x28] sm:$0xff]  ;;  %v375_v31 = vld [vmem:[#allocation6 + $0x30] sm:$0xff]  ;;  %vm456_vm5 = vcmp.lt.s32.totalorder %v793_v9, 32 }
  0x27   :  { %v624_v30 = vpack.c.bf16 %v374_v29, %v373_v28  ;;  %v376_v32 = vld [vmem:[#allocation6 + $0x38] sm:$0xff]  ;;  %v377_v34 = vld [vmem:[#allocation6 + $0x40] sm:$0xff]  ;;  %v378_v35 = vld [vmem:[#allocation6 + $0x48] sm:$0xff] }
  0x28   :  { %619 = vmatpush3.bf16.msra.mxu0 %v618_v25  ;;  %v627_v33 = vpack.c.bf16 %v376_v32, %v375_v31  ;;  %v630_v36 = vpack.c.bf16 %v378_v35, %v377_v34  ;;  %v379_v37 = vld [vmem:[#allocation6 + $0x50] sm:$0xff]  ;;  %v380_v38 = vld [vmem:[#allocation6 + $0x58] sm:$0xff]  ;;  %v381_v40 = vld [vmem:[#allocation6 + $0x60] sm:$0xff] }
  0x29   :  { %604 = vmatpush3.bf16.msra.mxu1 %v603_v8  ;;  %v59_v12 = vstv %s58_s22  ;;  %v215_v16 = vstv %s491_s26  ;;  %620 = vmatprep.subr.bf16.mxu0 %v722_v4  ;;  %v633_v39 = vpack.c.bf16 %v380_v38, %v379_v37  ;;  %v382_v41 = vld [vmem:[#allocation6 + $0x68] sm:$0xff]  ;;  %v383_v45 = vld [vmem:[#allocation6 + $0x70] sm:$0xff]  ;;  %v384_v46 = vld [vmem:[#allocation6 + $0x78] sm:$0xff] }
  0x2a   :  { %vm60_vm2 = vcmp.eq.s32.totalorder %v793_v9, %v59_v12  ;;  %605 = vmatprep.subr.bf16.mxu1 %v722_v4  ;;  %vm216_vm4 = vcmp.eq.s32.totalorder %v793_v9, %v215_v16  ;;  %v636_v42 = vpack.c.bf16 %v382_v41, %v381_v40  ;;  %v639_v47 = vpack.c.bf16 %v384_v46, %v383_v45  ;;  %v57_v48 = vld [vmem:[%s849_s3] sm:$0x1]  ;;  %s725_s3 = smov [#allocation7]  }
  0x2b   :  { %v488_v14 = vsel %vm60_vm2, 1.0, %v724_v7  ;;  %v492_v20 = vsel %vm216_vm4, 1.0, %v724_v7  ;;  %v385_v53 = vld [vmem:[%s851_s5] sm:$0x1]  ;;  %s478_s5 = sshll.u32 %s725_s3, 4  ;;  %s479_s5 = int_to_ptr.vmem [resolvable:$true] %s478_s5 }
  0x2c   :  { %537 = vmatmul.mubr.msk.f32.vlgmr.msra.gmra.mrb[0].mxu1 %vm63_vm1, %v488_v14  ;;  %622 = vmatpush3.bf16.msra.mxu0 %v621_v27  ;;  %s690_s9 = scalar_lea.vmem %s479_s5, 16  ;;  %s694_s10 = scalar_lea.vmem %s479_s5, 32 }
  0x2d   :  { %607 = vmatpush3.bf16.msra.mxu1 %v606_v13  ;;  %543 = vmatprep.mubr.msk.f32.mxu1 %vm723_vm0, %v724_v7  ;;  %p691_p13 = scmp.ne.s32.totalorder %s479_s5, %s690_s9  ;;  %p695_p0 = scmp.lt.s32.totalorder %s479_s5, %s479_s5 }
  0x2e   :  { %608 = vmatprep.subr.bf16.mxu1 %v722_v4  ;;  %623 = vmatprep.subr.bf16.mxu0 %v722_v4  ;;  %p696_p1 = scmp.lt.s32.totalorder %s694_s10, %s690_s9 }
  0x30   :  { %625 = vmatpush3.bf16.msra.mxu0 %v624_v30  ;;  %p697_p2 = por %p696_p1, %p695_p0 }
  0x31   :  { %626 = vmatprep.subr.bf16.mxu0 %v722_v4 }
  0x32   :  { %p698_p3 = pnand %p697_p2, %p691_p13 }
  0x34   :  { %628 = vmatpush3.bf16.msra.mxu0 %v627_v33 }
  0x35   :  { %629 = vmatprep.subr.bf16.mxu0 %v722_v4 }
  0x38   :  { %631 = vmatpush3.bf16.msra.mxu0 %v630_v36 }
  0x39   :  { %632 = vmatprep.subr.bf16.mxu0 %v722_v4 }
  0x3c   :  { %634 = vmatpush3.bf16.msra.mxu0 %v633_v39 }
  0x3d   :  { %635 = vmatprep.subr.bf16.mxu0 %v722_v4 }
  0x40   :  { %637 = vmatpush3.bf16.msra.mxu0 %v636_v42 }
  0x41   :  { %638 = vmatprep.subr.bf16.mxu0 %v722_v4 }
  0x44   :  { %640 = vmatpush3.bf16.msra.mxu0 %v639_v47 }
  0xff   :  { %v133_v15 = vpop.f32.mrb[0].mxu1 }
 0x100   :  { %v538_v17 = vpop.f32.mrb[1].mxu1  ;;  %544 = vmatmul.mubr.msk.f32.vlgmr.msra.gmra.mrb[2].mxu1 %vm139_vm3, %v133_v15 }
 0x101   :  { %610 = vmatpush3.bf16.msra.mxu1 %v600_v5  ;;  %554 = vmatprep.mubr.msk.f32.mxu1 %vm723_vm0, %v724_v7 }
 0x102   :  { %611 = vmatprep.subr.bf16.mxu1 %v722_v4 }
 0x105   :  { %613 = vmatpush3.bf16.msra.mxu1 %v603_v8 }
 0x106   :  { %614 = vmatprep.subr.bf16.mxu1 %v722_v4 }
 0x108   :  { %555 = vmatmul.mubr.msk.f32.vlgmr.msra.gmra.mrb[4].mxu1 %vm63_vm1, %v492_v20 }
 0x109   :  { %616 = vmatpush3.bf16.msra.mxu1 %v615_v21  ;;  %561 = vmatprep.mubr.msk.f32.mxu1 %vm723_vm0, %v724_v7 }
 0x1db   :  { %v288_v43 = vpop.f32.mrb[4].mxu1 }
 0x1dc   :  { %v556_v44 = vpop.f32.mrb[5].mxu1  ;;  %562 = vmatmul.mubr.msk.f32.vlgmr.msra.gmra.mrb[2].mxu1 %vm139_vm3, %v288_v43 }
 0x2af   :  { %v363_v49 = vpop.f32.mrb[2].mxu1 }
 0x2b0   :  { %v641_v50 = vadd.f32 %v363_v49, %v57_v48  ;;  %v563_v51 = vpop.f32.mrb[3].mxu1 }
 0x2b2   :  { %v368_v52 = vmax.f32 %v641_v50, 0.0 }
 0x2b4   :  { %597 = vmatmul.mubr.f32.vlgmr.msra.gmra.mrb[0].mxu0 %v368_v52 }
 0x387   :  { %v452_v54 = vpop.f32.mrb[0].mxu0 }
 0x388   :  { %v453_v55 = vadd.f32 %v452_v54, %v385_v53  ;;  %v598_v56 = vpop.f32.mrb[1].mxu0 }
 0x38a   :  { %v457_v57 = vsel %vm456_vm5, %v453_v55, -inf }
 0x38b   :  { %v459_v58 = vsel %vm458_vm6, %v457_v57, -inf }
 0x38c   :  { %460 = vmax.xlane.f32.xlu0 %v459_v58 }
 0x419   :  { %v461_v59 = vpop.xlane.xlu0 %460 }
 0x41a   :  { %v462_v60 = vsub.f32 %v457_v57, %v461_v59 }
 0x41c   :  { %v463_v61 = vmul.f32 1.442695, %v462_v60 }
 0x41e   :  { %652 = vpow2.f32 %v463_v61 }
 0x428   :  { %v653_v62 = vpop.eup %652 }
 0x429   :  { %v465_v63 = vsel %vm458_vm6, %v653_v62, 0.0 }
 0x42a   :  { %466 = vadd.xlane.f32.xlu0 %v465_v63 }
 0x4b7   :  { %v467_v0 = vpop.xlane.xlu0 %466 }
 0x4b8   :  { %654 = vlog2.f32 %v467_v0 }
 0x4c2   :  { %v655_v1 = vpop.eup %654 }
 0x4c3   :  { %v469_v2 = vmul.f32 0.6931472, %v655_v1 }
 0x4c5   :  { %v470_v3 = vsub.f32 %v462_v60, %v469_v2 }
 0x4c7   :  { %471 = vst [vmem:[#allocation7] sm:$0x1] %v470_v3 }
 0x4c8   :  { %701 = shalt.err (!%p698_p3)
}
 0x4c9   :  { %s702_s13 = scalar_lea.hbm %s852_s6, 16 }
 0x4ca   :  { %p703_p4 = scmp.ne.s32.totalorder %s852_s6, %s702_s13  ;;  %p706_p5 = scmp.lt.u32.totalorder %s702_s13, %s852_s6 }
 0x4cc   :  { %p708_p6 = pnand %p706_p5, %p703_p4 }
 0x4ce   :  { %711 = shalt.err (!%p708_p6)
}
 0x4cf   :  { %481 = dma.vmem_to_hbm [thread:$0]  %s479_s5, 16, %s852_s6, [#allocation4]  }
 0x4d0   :  { %716 = dma.done.wait [#allocation4], 16  }
 0x4d1   :  { %717 = vsyncadd [#allocation4], 4294967280 }
 0x4d2   :  { %485 = vsyncpa [#allocation3], 1 }
 0x4d3   :  { %486 = vsyncpa [#allocation4], 1 }
 0x4d4   :  { %487 = vsyncpa [#allocation5], 1 }

</bundles_post_ra>
